<compile_context>
chip_gen: v5e
topology: v5e:2x2
jax: 0.10.0
libtpu: 0.0.40
codegen_flags: <defaults>
</compile_context>

<pallas_src>
import jax
import jax.numpy as jnp
from jax.experimental import pallas as pl
from jax.experimental.pallas import tpu as pltpu

BN_EPS = 1e-5
LANE = 128          # pad every feature dim to a multiple of the lane width
SUBLANE_BF16 = 16   # pad the batch dim to the bf16 sublane pack


def _round_up(n, m):
    return ((n + m - 1) // m) * m


def _pad2(a, rows, cols):
    r, c = a.shape
    return jnp.pad(a, ((0, rows - r), (0, cols - c)))


def _bn_train(h, gamma, beta, inv_n, mask_f):
    """BatchNorm1d training forward (biased batch variance, centered two-pass).

    `h` already has its zero-padded batch rows zeroed (mask applied by caller),
    so the plain column sums are the valid-row sums.  `mask_f` (or None)
    re-zeroes the padded rows of the centered tensor before the variance sum.
    """
    mean = jnp.sum(h, axis=0, keepdims=True) * inv_n
    centered = h - mean
    if mask_f is not None:
        centered = centered * mask_f
    var = jnp.sum(centered * centered, axis=0, keepdims=True) * inv_n
    scale = gamma * jax.lax.rsqrt(var + jnp.float32(BN_EPS))   # rsqrt -> EUP slot
    shift = beta - mean * scale
    return h * scale + shift                                   # single scale/shift


def _make_kernel(b_valid, b_pad):
    need_mask = b_pad != b_valid
    inv_n = 1.0 / float(b_valid)

    def kernel(x_ref,
               w1_ref, w2_ref, w3_ref, w4_ref,
               s12_ref, s3_ref, b4_ref,
               o_ref):
        f32 = jnp.float32
        bf16 = jnp.bfloat16

        mask_f = None
        if need_mask:
            mask_f = (jax.lax.broadcasted_iota(jnp.int32, (b_pad, 1), 0)
                      < b_valid).astype(f32)

        # Packed bias/gamma/beta slabs (one DMA each instead of eight).
        s12 = s12_ref[...]                       # (6, Hp) f32
        b1, g1, be1 = s12[0:1], s12[1:2], s12[2:3]
        b2, g2, be2 = s12[3:4], s12[4:5], s12[5:6]
        s3 = s3_ref[...]                         # (3, Op) f32
        b3, g3, be3 = s3[0:1], s3[1:2], s3[2:3]

        def layer(h_bf16, w_ref, b, g, be):
            # bf16 MXU matmul, f32 accumulation; f32 epilogue.
            h = jnp.dot(h_bf16, w_ref[...], preferred_element_type=f32)
            h = jnp.maximum(h + b, 0.0)
            if mask_f is not None:
                h = h * mask_f                    # zero padded rows once per layer
            return _bn_train(h, g, be, inv_n, mask_f)

        h = layer(x_ref[...], w1_ref, b1, g1, be1)        # fc1 -> relu -> bn1
        h = layer(h.astype(bf16), w2_ref, b2, g2, be2)    # fc2 -> relu -> bn2
        h = layer(h.astype(bf16), w3_ref, b3, g3, be3)    # fc3 -> relu -> bn3

        out = jnp.dot(h.astype(bf16), w4_ref[...], preferred_element_type=f32)
        o_ref[...] = (out + b4_ref[...]).astype(o_ref.dtype)    # fc4

    return kernel


def prepare_params(params):
    """One-time padding + casting of the weights.  Call once, reuse the result
    across forward calls so the hot path carries no pad/convert XLA ops."""
    in_dim, hidden = params["w1"].shape
    out_dim = params["w3"].shape[1]
    binary = params["w4"].shape[1]

    Kp = _round_up(in_dim, LANE)
    Hp = _round_up(hidden, LANE)
    Op = _round_up(out_dim, LANE)
    Cp = _round_up(binary, LANE)

    bf16, f32 = jnp.bfloat16, jnp.float32

    w1 = _pad2(params["w1"], Kp, Hp).astype(bf16)
    w2 = _pad2(params["w2"], Hp, Hp).astype(bf16)
    w3 = _pad2(params["w3"], Hp, Op).astype(bf16)
    w4 = _pad2(params["w4"], Op, Cp).astype(bf16)

    # gamma/beta padded with 0 keeps padded feature columns exactly zero.
    s12 = jnp.concatenate([
        _pad2(params["b1"], 1, Hp), _pad2(params["g1"], 1, Hp), _pad2(params["be1"], 1, Hp),
        _pad2(params["b2"], 1, Hp), _pad2(params["g2"], 1, Hp), _pad2(params["be2"], 1, Hp),
    ], axis=0).astype(f32)                                     # (6, Hp)
    s3 = jnp.concatenate([
        _pad2(params["b3"], 1, Op), _pad2(params["g3"], 1, Op), _pad2(params["be3"], 1, Op),
    ], axis=0).astype(f32)                                     # (3, Op)
    b4 = _pad2(params["b4"], 1, Cp).astype(f32)                # (1, Cp)

    return dict(w1=w1, w2=w2, w3=w3, w4=w4, s12=s12, s3=s3, b4=b4,
                dims=(in_dim, hidden, out_dim, binary),
                padded=(Kp, Hp, Op, Cp))


def _vmem_capacity_bytes():
    try:
        return int(pltpu.get_tpu_info().vmem_capacity_bytes)
    except Exception:
        return 64 << 20   # conservative (v7x per-TC) fallback


def mlp_decoder(x, prep):
    """x: (B, in_dim) float32.  prep: output of prepare_params(params)."""
    B = x.shape[0]
    _, _, _, binary = prep["dims"]
    Kp, Hp, Op, Cp = prep["padded"]

    Bp = _round_up(max(B, 1), SUBLANE_BF16)

    # Only per-call work: pad + pre-cast the activation (bf16 halves its DMA).
    xp = _pad2(x, Bp, Kp).astype(jnp.bfloat16)

    args = (xp, prep["w1"], prep["w2"], prep["w3"], prep["w4"],
            prep["s12"], prep["s3"], prep["b4"])

    # Single grid point: every (padded) operand lives whole in VMEM.
    full_spec = lambda a: pl.BlockSpec(a.shape, lambda: (0,) * a.ndim)

    in_bytes = sum(int(a.size) * a.dtype.itemsize for a in args)
    out_bytes = Bp * Cp * 4
    work_bytes = 4 * Bp * max(Kp, Hp, Op, Cp) * 4      # live f32 intermediates
    # Single grid point -> no pipelining -> no 2x double-buffer factor.
    needed = in_bytes + out_bytes + work_bytes + (2 << 20)
    vmem_limit = int(min(max(needed, 8 << 20), int(_vmem_capacity_bytes() * 0.9)))

    flops = 2 * Bp * (Kp * Hp + Hp * Hp + Hp * Op + Op * Cp)
    cost = pl.CostEstimate(
        flops=flops,
        transcendentals=2 * Hp + Op,          # one rsqrt per BN feature column
        bytes_accessed=in_bytes + out_bytes,
    )

    out_padded = pl.pallas_call(
        _make_kernel(B, Bp),
        out_shape=jax.ShapeDtypeStruct((Bp, Cp), jnp.float32),
        in_specs=[full_spec(a) for a in args],
        out_specs=pl.BlockSpec((Bp, Cp), lambda: (0, 0)),
        compiler_params=pltpu.CompilerParams(vmem_limit_bytes=vmem_limit),
        cost_estimate=cost,
    )(*args)

    return out_padded[:B, :binary]


def init_params(key, in_dim, hidden_dim, out_dim, binary=2):
    """Synthetic parameters matching nn.Linear / nn.BatchNorm1d shapes.

    Linear weights are stored already transposed: (fan_in, fan_out).
    Biases / gamma / beta are (1, fan_out) rows.
    """
    keys = jax.random.split(key, 8)

    def lin(kw, kb, fan_in, fan_out):
        bound = 1.0 / jnp.sqrt(jnp.float32(fan_in))
        w = jax.random.uniform(kw, (fan_in, fan_out), jnp.float32, -bound, bound)
        b = jax.random.uniform(kb, (1, fan_out), jnp.float32, -bound, bound)
        return w, b

    w1, b1 = lin(keys[0], keys[1], in_dim, hidden_dim)
    w2, b2 = lin(keys[2], keys[3], hidden_dim, hidden_dim)
    w3, b3 = lin(keys[4], keys[5], hidden_dim, out_dim)
    w4, b4 = lin(keys[6], keys[7], out_dim, binary)

    return dict(
        w1=w1, b1=b1,
        g1=jnp.ones((1, hidden_dim), jnp.float32), be1=jnp.zeros((1, hidden_dim), jnp.float32),
        w2=w2, b2=b2,
        g2=jnp.ones((1, hidden_dim), jnp.float32), be2=jnp.zeros((1, hidden_dim), jnp.float32),
        w3=w3, b3=b3,
        g3=jnp.ones((1, out_dim), jnp.float32), be3=jnp.zeros((1, out_dim), jnp.float32),
        w4=w4, b4=b4,
    )


def mlp_decoder_ref_matched(x, p):
    """Pure-JAX reference with the kernel's precision policy (bf16 matmul
    operands, f32 accumulation, f32 centered-variance BN)."""
    bf16, f32 = jnp.bfloat16, jnp.float32

    def dot(a, w):
        return jnp.dot(a.astype(bf16), w.astype(bf16), preferred_element_type=f32)

    def bn(h, g, b):
        m = jnp.mean(h, axis=0, keepdims=True)
        v = jnp.mean((h - m) ** 2, axis=0, keepdims=True)
        scale = g * jax.lax.rsqrt(v + BN_EPS)
        return h * scale + (b - m * scale)

    h = bn(jnp.maximum(dot(x, p["w1"]) + p["b1"], 0.0), p["g1"], p["be1"])
    h = bn(jnp.maximum(dot(h, p["w2"]) + p["b2"], 0.0), p["g2"], p["be2"])
    h = bn(jnp.maximum(dot(h, p["w3"]) + p["b3"], 0.0), p["g3"], p["be3"])
    return dot(h, p["w4"]) + p["b4"]


def mlp_decoder_ref_f32(x, p):
    """Full-f32 reference (matches the PyTorch module exactly)."""
    def bn(h, g, b):
        m = jnp.mean(h, axis=0, keepdims=True)
        v = jnp.mean((h - m) ** 2, axis=0, keepdims=True)
        return (h - m) / jnp.sqrt(v + BN_EPS) * g + b

    h = bn(jnp.maximum(x @ p["w1"] + p["b1"], 0.0), p["g1"], p["be1"])
    h = bn(jnp.maximum(h @ p["w2"] + p["b2"], 0.0), p["g2"], p["be2"])
    h = bn(jnp.maximum(h @ p["w3"] + p["b3"], 0.0), p["g3"], p["be3"])
    return h @ p["w4"] + p["b4"]


if __name__ == "__main__":
    key = jax.random.PRNGKey(0)
    k_x, k_p = jax.random.split(key)

    # Small shapes consistent with MLPDecoder(in_dim, hidden_dim, out_dim, binary=2).
    B, in_dim, hidden_dim, out_dim, binary = 8, 32, 32, 16, 2

    x = jax.random.normal(k_x, (B, in_dim), jnp.float32)
    params = init_params(k_p, in_dim, hidden_dim, out_dim, binary)

    # One-time padding / casting (cached and reused across forward calls).
    prep = prepare_params(params)

    out = jax.block_until_ready(mlp_decoder(x, prep))
    assert out.shape == (B, binary), out.shape

    # Tight check against a matched-precision (bf16 matmul, f32 accum) reference.
    ref = mlp_decoder_ref_matched(x, params)
    assert jnp.allclose(out, ref, atol=1e-2, rtol=1e-2), (
        "mismatch vs matched-precision reference, max |diff| = "
        + str(float(jnp.max(jnp.abs(out - ref)))))

    # Sanity check against the full-f32 forward (drift comes only from the
    # bf16 MXU operands; tolerance loosened accordingly).
    ref32 = mlp_decoder_ref_f32(x, params)
    assert jnp.max(jnp.abs(out - ref32)) < 0.25, float(jnp.max(jnp.abs(out - ref32)))

    print("KERNEL_OK")
</pallas_src>

<mosaic_0001>
module attributes {stable_mosaic.version = 11 : i64} {
  func.func @kernel(%arg0: memref<16x128xbf16, #tpu.memory_space<vmem>>, %arg1: memref<128x128xbf16, #tpu.memory_space<vmem>>, %arg2: memref<128x128xbf16, #tpu.memory_space<vmem>>, %arg3: memref<128x128xbf16, #tpu.memory_space<vmem>>, %arg4: memref<128x128xbf16, #tpu.memory_space<vmem>>, %arg5: memref<6x128xf32, #tpu.memory_space<vmem>>, %arg6: memref<3x128xf32, #tpu.memory_space<vmem>>, %arg7: memref<1x128xf32, #tpu.memory_space<vmem>>, %arg8: memref<16x128xf32, #tpu.memory_space<vmem>>) attributes {dimension_semantics = [], scalar_prefetch = 0 : i64, scratch_operands = 0 : i64, tpu.core_type = #tpu.core_type<tc>} {
    %0 = tpu.iota {dimensions = array<i32: 0>} : vector<16x1xi32>
    %c8_i32 = arith.constant 8 : i32
    %1 = vector.broadcast %c8_i32 : i32 to vector<16x1xi32>
    %2 = arith.cmpi slt, %0, %1 : vector<16x1xi32>
    %3 = arith.extui %2 : vector<16x1xi1> to vector<16x1xi32>
    %4 = arith.sitofp %3 : vector<16x1xi32> to vector<16x1xf32>
    %c0 = arith.constant 0 : index
    %c0_0 = arith.constant 0 : index
    %5 = vector.load %arg5[%c0, %c0_0] : memref<6x128xf32, #tpu.memory_space<vmem>>, vector<6x128xf32>
    %6 = vector.extract_strided_slice %5 {offsets = [0, 0], sizes = [1, 128], strides = [1, 1]} : vector<6x128xf32> to vector<1x128xf32>
    %7 = vector.extract_strided_slice %5 {offsets = [1, 0], sizes = [1, 128], strides = [1, 1]} : vector<6x128xf32> to vector<1x128xf32>
    %8 = vector.extract_strided_slice %5 {offsets = [2, 0], sizes = [1, 128], strides = [1, 1]} : vector<6x128xf32> to vector<1x128xf32>
    %9 = vector.extract_strided_slice %5 {offsets = [3, 0], sizes = [1, 128], strides = [1, 1]} : vector<6x128xf32> to vector<1x128xf32>
    %10 = vector.extract_strided_slice %5 {offsets = [4, 0], sizes = [1, 128], strides = [1, 1]} : vector<6x128xf32> to vector<1x128xf32>
    %11 = vector.extract_strided_slice %5 {offsets = [5, 0], sizes = [1, 128], strides = [1, 1]} : vector<6x128xf32> to vector<1x128xf32>
    %c0_1 = arith.constant 0 : index
    %c0_2 = arith.constant 0 : index
    %12 = vector.load %arg6[%c0_1, %c0_2] : memref<3x128xf32, #tpu.memory_space<vmem>>, vector<3x128xf32>
    %13 = vector.extract_strided_slice %12 {offsets = [0, 0], sizes = [1, 128], strides = [1, 1]} : vector<3x128xf32> to vector<1x128xf32>
    %14 = vector.extract_strided_slice %12 {offsets = [1, 0], sizes = [1, 128], strides = [1, 1]} : vector<3x128xf32> to vector<1x128xf32>
    %15 = vector.extract_strided_slice %12 {offsets = [2, 0], sizes = [1, 128], strides = [1, 1]} : vector<3x128xf32> to vector<1x128xf32>
    %c0_3 = arith.constant 0 : index
    %c0_4 = arith.constant 0 : index
    %16 = vector.load %arg0[%c0_3, %c0_4] : memref<16x128xbf16, #tpu.memory_space<vmem>>, vector<16x128xbf16>
    %c0_5 = arith.constant 0 : index
    %c0_6 = arith.constant 0 : index
    %17 = vector.load %arg1[%c0_5, %c0_6] : memref<128x128xbf16, #tpu.memory_space<vmem>>, vector<128x128xbf16>
    %cst = arith.constant dense<0.000000e+00> : vector<16x128xf32>
    %18 = tpu.matmul %16, %17, %cst {dimension_numbers = #tpu.dot_dimension_numbers<[1], [0], [0], [1], [0, 0, 1, 1], [], []>} : vector<16x128xbf16>, vector<128x128xbf16>, vector<16x128xf32> -> vector<16x128xf32>
    %19 = vector.broadcast %6 : vector<1x128xf32> to vector<16x128xf32>
    %20 = arith.addf %18, %19 : vector<16x128xf32>
    %cst_7 = arith.constant 0.000000e+00 : f32
    %21 = vector.broadcast %cst_7 : f32 to vector<16x128xf32>
    %22 = arith.maximumf %20, %21 : vector<16x128xf32>
    %23 = vector.broadcast %4 : vector<16x1xf32> to vector<16x128xf32>
    %24 = arith.mulf %22, %23 : vector<16x128xf32>
    %cst_8 = arith.constant dense<0.000000e+00> : vector<128xf32>
    %25 = vector.multi_reduction <add>, %24, %cst_8 [0] : vector<16x128xf32> to vector<128xf32>
    %26 = vector.shape_cast %25 : vector<128xf32> to vector<1x128xf32>
    %cst_9 = arith.constant 1.250000e-01 : f32
    %27 = vector.broadcast %cst_9 : f32 to vector<1x128xf32>
    %28 = arith.mulf %26, %27 : vector<1x128xf32>
    %29 = vector.broadcast %28 : vector<1x128xf32> to vector<16x128xf32>
    %30 = arith.subf %24, %29 : vector<16x128xf32>
    %31 = vector.broadcast %4 : vector<16x1xf32> to vector<16x128xf32>
    %32 = arith.mulf %30, %31 : vector<16x128xf32>
    %33 = arith.mulf %32, %32 : vector<16x128xf32>
    %cst_10 = arith.constant dense<0.000000e+00> : vector<128xf32>
    %34 = vector.multi_reduction <add>, %33, %cst_10 [0] : vector<16x128xf32> to vector<128xf32>
    %35 = vector.shape_cast %34 : vector<128xf32> to vector<1x128xf32>
    %cst_11 = arith.constant 1.250000e-01 : f32
    %36 = vector.broadcast %cst_11 : f32 to vector<1x128xf32>
    %37 = arith.mulf %35, %36 : vector<1x128xf32>
    %cst_12 = arith.constant 9.99999974E-6 : f32
    %38 = vector.broadcast %cst_12 : f32 to vector<1x128xf32>
    %39 = arith.addf %37, %38 : vector<1x128xf32>
    %40 = math.rsqrt %39 : vector<1x128xf32>
    %41 = arith.mulf %7, %40 : vector<1x128xf32>
    %42 = arith.mulf %28, %41 : vector<1x128xf32>
    %43 = arith.subf %8, %42 : vector<1x128xf32>
    %44 = vector.broadcast %41 : vector<1x128xf32> to vector<16x128xf32>
    %45 = arith.mulf %24, %44 : vector<16x128xf32>
    %46 = vector.broadcast %43 : vector<1x128xf32> to vector<16x128xf32>
    %47 = arith.addf %45, %46 : vector<16x128xf32>
    %48 = arith.truncf %47 : vector<16x128xf32> to vector<16x128xbf16>
    %c0_13 = arith.constant 0 : index
    %c0_14 = arith.constant 0 : index
    %49 = vector.load %arg2[%c0_13, %c0_14] : memref<128x128xbf16, #tpu.memory_space<vmem>>, vector<128x128xbf16>
    %cst_15 = arith.constant dense<0.000000e+00> : vector<16x128xf32>
    %50 = tpu.matmul %48, %49, %cst_15 {dimension_numbers = #tpu.dot_dimension_numbers<[1], [0], [0], [1], [0, 0, 1, 1], [], []>} : vector<16x128xbf16>, vector<128x128xbf16>, vector<16x128xf32> -> vector<16x128xf32>
    %51 = vector.broadcast %9 : vector<1x128xf32> to vector<16x128xf32>
    %52 = arith.addf %50, %51 : vector<16x128xf32>
    %cst_16 = arith.constant 0.000000e+00 : f32
    %53 = vector.broadcast %cst_16 : f32 to vector<16x128xf32>
    %54 = arith.maximumf %52, %53 : vector<16x128xf32>
    %55 = vector.broadcast %4 : vector<16x1xf32> to vector<16x128xf32>
    %56 = arith.mulf %54, %55 : vector<16x128xf32>
    %cst_17 = arith.constant dense<0.000000e+00> : vector<128xf32>
    %57 = vector.multi_reduction <add>, %56, %cst_17 [0] : vector<16x128xf32> to vector<128xf32>
    %58 = vector.shape_cast %57 : vector<128xf32> to vector<1x128xf32>
    %cst_18 = arith.constant 1.250000e-01 : f32
    %59 = vector.broadcast %cst_18 : f32 to vector<1x128xf32>
    %60 = arith.mulf %58, %59 : vector<1x128xf32>
    %61 = vector.broadcast %60 : vector<1x128xf32> to vector<16x128xf32>
    %62 = arith.subf %56, %61 : vector<16x128xf32>
    %63 = vector.broadcast %4 : vector<16x1xf32> to vector<16x128xf32>
    %64 = arith.mulf %62, %63 : vector<16x128xf32>
    %65 = arith.mulf %64, %64 : vector<16x128xf32>
    %cst_19 = arith.constant dense<0.000000e+00> : vector<128xf32>
    %66 = vector.multi_reduction <add>, %65, %cst_19 [0] : vector<16x128xf32> to vector<128xf32>
    %67 = vector.shape_cast %66 : vector<128xf32> to vector<1x128xf32>
    %cst_20 = arith.constant 1.250000e-01 : f32
    %68 = vector.broadcast %cst_20 : f32 to vector<1x128xf32>
    %69 = arith.mulf %67, %68 : vector<1x128xf32>
    %cst_21 = arith.constant 9.99999974E-6 : f32
    %70 = vector.broadcast %cst_21 : f32 to vector<1x128xf32>
    %71 = arith.addf %69, %70 : vector<1x128xf32>
    %72 = math.rsqrt %71 : vector<1x128xf32>
    %73 = arith.mulf %10, %72 : vector<1x128xf32>
    %74 = arith.mulf %60, %73 : vector<1x128xf32>
    %75 = arith.subf %11, %74 : vector<1x128xf32>
    %76 = vector.broadcast %73 : vector<1x128xf32> to vector<16x128xf32>
    %77 = arith.mulf %56, %76 : vector<16x128xf32>
    %78 = vector.broadcast %75 : vector<1x128xf32> to vector<16x128xf32>
    %79 = arith.addf %77, %78 : vector<16x128xf32>
    %80 = arith.truncf %79 : vector<16x128xf32> to vector<16x128xbf16>
    %c0_22 = arith.constant 0 : index
    %c0_23 = arith.constant 0 : index
    %81 = vector.load %arg3[%c0_22, %c0_23] : memref<128x128xbf16, #tpu.memory_space<vmem>>, vector<128x128xbf16>
    %cst_24 = arith.constant dense<0.000000e+00> : vector<16x128xf32>
    %82 = tpu.matmul %80, %81, %cst_24 {dimension_numbers = #tpu.dot_dimension_numbers<[1], [0], [0], [1], [0, 0, 1, 1], [], []>} : vector<16x128xbf16>, vector<128x128xbf16>, vector<16x128xf32> -> vector<16x128xf32>
    %83 = vector.broadcast %13 : vector<1x128xf32> to vector<16x128xf32>
    %84 = arith.addf %82, %83 : vector<16x128xf32>
    %cst_25 = arith.constant 0.000000e+00 : f32
    %85 = vector.broadcast %cst_25 : f32 to vector<16x128xf32>
    %86 = arith.maximumf %84, %85 : vector<16x128xf32>
    %87 = vector.broadcast %4 : vector<16x1xf32> to vector<16x128xf32>
    %88 = arith.mulf %86, %87 : vector<16x128xf32>
    %cst_26 = arith.constant dense<0.000000e+00> : vector<128xf32>
    %89 = vector.multi_reduction <add>, %88, %cst_26 [0] : vector<16x128xf32> to vector<128xf32>
    %90 = vector.shape_cast %89 : vector<128xf32> to vector<1x128xf32>
    %cst_27 = arith.constant 1.250000e-01 : f32
    %91 = vector.broadcast %cst_27 : f32 to vector<1x128xf32>
    %92 = arith.mulf %90, %91 : vector<1x128xf32>
    %93 = vector.broadcast %92 : vector<1x128xf32> to vector<16x128xf32>
    %94 = arith.subf %88, %93 : vector<16x128xf32>
    %95 = vector.broadcast %4 : vector<16x1xf32> to vector<16x128xf32>
    %96 = arith.mulf %94, %95 : vector<16x128xf32>
    %97 = arith.mulf %96, %96 : vector<16x128xf32>
    %cst_28 = arith.constant dense<0.000000e+00> : vector<128xf32>
    %98 = vector.multi_reduction <add>, %97, %cst_28 [0] : vector<16x128xf32> to vector<128xf32>
    %99 = vector.shape_cast %98 : vector<128xf32> to vector<1x128xf32>
    %cst_29 = arith.constant 1.250000e-01 : f32
    %100 = vector.broadcast %cst_29 : f32 to vector<1x128xf32>
    %101 = arith.mulf %99, %100 : vector<1x128xf32>
    %cst_30 = arith.constant 9.99999974E-6 : f32
    %102 = vector.broadcast %cst_30 : f32 to vector<1x128xf32>
    %103 = arith.addf %101, %102 : vector<1x128xf32>
    %104 = math.rsqrt %103 : vector<1x128xf32>
    %105 = arith.mulf %14, %104 : vector<1x128xf32>
    %106 = arith.mulf %92, %105 : vector<1x128xf32>
    %107 = arith.subf %15, %106 : vector<1x128xf32>
    %108 = vector.broadcast %105 : vector<1x128xf32> to vector<16x128xf32>
    %109 = arith.mulf %88, %108 : vector<16x128xf32>
    %110 = vector.broadcast %107 : vector<1x128xf32> to vector<16x128xf32>
    %111 = arith.addf %109, %110 : vector<16x128xf32>
    %112 = arith.truncf %111 : vector<16x128xf32> to vector<16x128xbf16>
    %c0_31 = arith.constant 0 : index
    %c0_32 = arith.constant 0 : index
    %113 = vector.load %arg4[%c0_31, %c0_32] : memref<128x128xbf16, #tpu.memory_space<vmem>>, vector<128x128xbf16>
    %cst_33 = arith.constant dense<0.000000e+00> : vector<16x128xf32>
    %114 = tpu.matmul %112, %113, %cst_33 {dimension_numbers = #tpu.dot_dimension_numbers<[1], [0], [0], [1], [0, 0, 1, 1], [], []>} : vector<16x128xbf16>, vector<128x128xbf16>, vector<16x128xf32> -> vector<16x128xf32>
    %c0_34 = arith.constant 0 : index
    %c0_35 = arith.constant 0 : index
    %115 = vector.load %arg7[%c0_34, %c0_35] : memref<1x128xf32, #tpu.memory_space<vmem>>, vector<1x128xf32>
    %116 = vector.broadcast %115 : vector<1x128xf32> to vector<16x128xf32>
    %117 = arith.addf %114, %116 : vector<16x128xf32>
    %c0_36 = arith.constant 0 : index
    %c0_37 = arith.constant 0 : index
    %118 = vector.load %arg8[%c0_36, %c0_37] : memref<16x128xf32, #tpu.memory_space<vmem>>, vector<16x128xf32>
    tpu.vector_store %arg8[%c0_36, %c0_37], %117 {strides = array<i32>} : memref<16x128xf32, #tpu.memory_space<vmem>>, vector<16x128xf32>,
    return
  }
}

</mosaic_0001>

<bundles_post_ra>
// kernel: tpu_custom_call.1
= control target key start
LH: loop header
LB: loop body
LE: loop exit
PB: predicated region body
PF: predicated region fallthrough
CT: control target
= control target key end

     0   :  { %13 = vsyncpa [#allocation3], 0  ;;  %s1101_s0 = inlined_call_operand.hbm [shape: bf16[16,128], index: 0, kind: input, shape index: {}]   ;;  %s1102_s1 = inlined_call_operand.hbm [shape: bf16[128,128], index: 1, kind: input, shape index: {}]   ;;  %s1103_s2 = inlined_call_operand.hbm [shape: bf16[128,128], index: 2, kind: input, shape index: {}]   ;;  %s1104_s3 = inlined_call_operand.hbm [shape: bf16[128,128], index: 3, kind: input, shape index: {}]   ;;  %s1105_s4 = inlined_call_operand.hbm [shape: bf16[128,128], index: 4, kind: input, shape index: {}]   ;;  %s1106_s5 = inlined_call_operand.hbm [shape: f32[6,128], index: 5, kind: input, shape index: {}]   ;;  %s1107_s6 = inlined_call_operand.vmem [shape: f32[3,128], index: 6, kind: input, shape index: {}]   ;;  %s1108_s7 = inlined_call_operand.vmem [shape: f32[1,128], index: 7, kind: input, shape index: {}]   ;;  %s1109_s8 = inlined_call_operand.hbm [shape: f32[16,128], index: 8, kind: output, shape index: {}]  }
   0x1   :  { %14 = vsyncpa [#allocation6], 0 }
   0x2   :  { %15 = vsyncpa [#allocation9], 0 }
   0x3   :  { %16 = vsyncpa [#allocation12], 0 }
   0x4   :  { %17 = vsyncpa [#allocation4], 0  ;;  %s35_s29 = sshll.u32 %s1102_s1, 4  ;;  %s995_s30 = smov [#allocation5]   ;;  %s36_s29 = int_to_ptr.hbm [resolvable:$true] %s35_s29 }
   0x5   :  { %s37_s9 = sshll.u32 %s995_s30, 4  ;;  %s61_s12 = sshll.u32 %s1104_s3, 4  ;;  %s38_s9 = int_to_ptr.vmem [resolvable:$true] %s37_s9  ;;  %s62_s12 = int_to_ptr.hbm [resolvable:$true] %s61_s12 }
   0x6   :  { %s996_s13 = smov 64   ;;  %s997_s14 = smov 4  }
   0x7   :  { %43 = dma.hbm_to_vmem [thread:$0]  %s36_s29, 1024, %s38_s9, [#allocation6], %s996_s13, %s996_s13, %s997_s14  }
   0x8   :  { %s998_s15 = smov [#allocation8]   ;;  %s22_s1 = sshll.u32 %s1101_s0, 4  ;;  %s23_s1 = int_to_ptr.hbm [resolvable:$true] %s22_s1 }
   0x9   :  { %s63_s16 = sshll.u32 %s998_s15, 4  ;;  %s48_s20 = sshll.u32 %s1103_s2, 4  ;;  %s64_s16 = int_to_ptr.vmem [resolvable:$true] %s63_s16  ;;  %s49_s20 = int_to_ptr.hbm [resolvable:$true] %s48_s20 }
   0xa   :  { %69 = dma.hbm_to_vmem [thread:$0]  %s62_s12, 1024, %s64_s16, [#allocation9], %s996_s13, %s996_s13, %s997_s14  }
   0xb   :  { %s999_s21 = smov [#allocation2]   ;;  %s1000_s23 = smov [#allocation7]  }
   0xc   :  { %s24_s22 = sshll.u32 %s999_s21, 4  ;;  %s50_s0 = sshll.u32 %s1000_s23, 4  ;;  %s25_s22 = int_to_ptr.vmem [resolvable:$true] %s24_s22  ;;  %s51_s0 = int_to_ptr.vmem [resolvable:$true] %s50_s0 }
   0xd   :  { %30 = dma.hbm_to_vmem [thread:$0]  %s23_s1, 128, %s25_s22, [#allocation3], %s996_s13, %s996_s13, %s997_s14  }
   0xe   :  { %s74_s26 = sshll.u32 %s1105_s4, 4  ;;  %s88_s28 = sshll.u32 %s1106_s5, 4  ;;  %s75_s26 = int_to_ptr.hbm [resolvable:$true] %s74_s26  ;;  %s89_s28 = int_to_ptr.hbm [resolvable:$true] %s88_s28 }
   0xf   :  { %56 = dma.hbm_to_vmem [thread:$0]  %s49_s20, 1024, %s51_s0, [#allocation6], %s996_s13, %s996_s13, %s997_s14  }
  0x10   :  { %s1001_s29 = smov [#allocation10]   ;;  %s1002_s9 = smov [#allocation11]  }
  0x11   :  { %s76_s30 = sshll.u32 %s1001_s29, 4  ;;  %s90_s4 = sshll.u32 %s1002_s9, 4  ;;  %s77_s30 = int_to_ptr.vmem [resolvable:$true] %s76_s30  ;;  %s91_s4 = int_to_ptr.vmem [resolvable:$true] %s90_s4 }
  0x12   :  { %82 = dma.hbm_to_vmem [thread:$0]  %s75_s26, 1024, %s77_s30, [#allocation9], %s996_s13, %s996_s13, %s997_s14  }
  0x13   :  { %93 = dma.hbm_to_vmem [thread:$0]  %s89_s28, 128, %s91_s4, [#allocation12]  }
  0x14   :  { %985 = dma.done.wait [#allocation3], 128  }
  0x15   :  { %986 = vsyncadd [#allocation3], 4294967168 }
  0x16   :  { %987 = dma.done.wait [#allocation6], 2048  }
  0x17   :  { %988 = vsyncadd [#allocation6], 4294965248 }
  0x18   :  { %989 = dma.done.wait [#allocation9], 2048  }
  0x19   :  { %990 = vsyncadd [#allocation9], 4294965248 }
  0x1a   :  { %991 = dma.done.wait [#allocation12], 128  }
  0x1b   :  { %992 = vsyncadd [#allocation12], 4294967168  ;;  %v774_v0 = vld [vmem:[#allocation5 + $0x38] sm:$0xff]  ;;  %v773_v1 = vld [vmem:[#allocation5 + $0x30] sm:$0xff]  ;;  %s1003_s12 = smov [#allocation13]   ;;  %s618_s16 = sshll.u32 %s1109_s8, 4  ;;  %s619_s16 = int_to_ptr.hbm [resolvable:$true] %s618_s16 }
  0x1c   :  { %206 = vmatpush.bf16.msra.mxu0 %v774_v0  ;;  %v772_v2 = vld [vmem:[#allocation5 + $0x28] sm:$0xff]  ;;  %v771_v3 = vld [vmem:[#allocation5 + $0x20] sm:$0xff]  ;;  %v770_v4 = vld [vmem:[#allocation5 + $0x18] sm:$0xff]  ;;  %s616_s13 = sshll.u32 %s1003_s12, 4  ;;  %s1004_s17 = smov 128   ;;  %s617_s13 = int_to_ptr.vmem [resolvable:$true] %s616_s13 }
  0x1d   :  { %v769_v5 = vld [vmem:[#allocation5 + $0x10] sm:$0xff]  ;;  %v768_v6 = vld [vmem:[#allocation5 + $0x8] sm:$0xff]  ;;  %v767_v7 = vld [vmem:[#allocation5] sm:$0xff]  ;;  %s1005_s18 = smov 8  }
  0x1e   :  { %v766_v8 = vld [vmem:[#allocation2] sm:$0xff]  ;;  %v1084_v10 = vld [vmem:[#allocation11] sm:$0x3f]  ;;  %v781_v24 = vld [vmem:[#allocation7 + $0x30] sm:$0xff] }
  0x1f   :  { %v151_v11 = vperm.slane %v1084_v10, 0  ;;  %v782_v22 = vld [vmem:[#allocation7 + $0x38] sm:$0xff]  ;;  %v780_v27 = vld [vmem:[#allocation7 + $0x28] sm:$0xff]  ;;  %v779_v31 = vld [vmem:[#allocation7 + $0x20] sm:$0xff] }
  0x20   :  { %207 = vmatpush.bf16.msra.mxu0 %v773_v1  ;;  %335 = vmatpush.bf16.msra.mxu1 %v782_v22  ;;  %v778_v35 = vld [vmem:[#allocation7 + $0x18] sm:$0xff]  ;;  %v777_v38 = vld [vmem:[#allocation7 + $0x10] sm:$0xff]  ;;  %v776_v41 = vld [vmem:[#allocation7 + $0x8] sm:$0xff] }
  0x21   :  { %v775_v44 = vld [vmem:[#allocation7] sm:$0xff] }
  0x24   :  { %208 = vmatpush.bf16.msra.mxu0 %v772_v2  ;;  %336 = vmatpush.bf16.msra.mxu1 %v781_v24  ;;  %v787_v24 = vld [vmem:[#allocation8 + $0x20] sm:$0xff] }
  0x28   :  { %209 = vmatpush.bf16.msra.mxu0 %v771_v3  ;;  %337 = vmatpush.bf16.msra.mxu1 %v780_v27  ;;  %v286_v3 = vperm.slane %v1084_v10, 3 }
  0x2c   :  { %210 = vmatpush.bf16.msra.mxu0 %v770_v4  ;;  %338 = vmatpush.bf16.msra.mxu1 %v779_v31  ;;  %v785_v31 = vld [vmem:[#allocation8 + $0x10] sm:$0xff] }
  0x30   :  { %211 = vmatpush.bf16.msra.mxu0 %v769_v5  ;;  %339 = vmatpush.bf16.msra.mxu1 %v778_v35 }
  0x34   :  { %212 = vmatpush.bf16.msra.mxu0 %v768_v6  ;;  %340 = vmatpush.bf16.msra.mxu1 %v777_v38 }
  0x38   :  { %213 = vmatpush.bf16.msra.mxu0 %v767_v7  ;;  %341 = vmatpush.bf16.msra.mxu1 %v776_v41 }
  0x3b   :  { %214 = vmatmul.bf16.vlgmr.msra.gmra.mxu0 %v766_v8 }
  0x3c   :  { %342 = vmatpush.bf16.msra.mxu1 %v775_v44 }
  0xb8   :  { %v215_v9 = vpop.f32.mrf.mxu0 }
  0xb9   :  { %v216_v13 = vadd.f32 %v215_v9, %v151_v11 }
  0xbb   :  { %v220_v16 = vmax.f32 %v216_v13, 0.0 }
  0xc0   :  { %v217_v12 = vpop.f32.mrf.mxu0 }
  0xc1   :  { %v218_v14 = vadd.f32 %v217_v12, %v151_v11 }
  0xc3   :  { %v221_v15 = vmax.f32 %v218_v14, 0.0 }
  0xc5   :  { %v223_v17 = vmul.f32 0.0, %v221_v15  ;;  %v790_v15 = vld [vmem:[#allocation8 + $0x38] sm:$0xff] }
  0xc6   :  { %464 = vmatpush.bf16.msra.mxu2 %v790_v15 }
  0xc7   :  { %v224_v18 = vadd.f32 %v223_v17, %v220_v16 }
  0xc9   :  { %v225_v19 = vrot.slane %v224_v18, 4 }
  0xcb   :  { %v226_v20 = vadd.f32 %v225_v19, %v224_v18 }
  0xcd   :  { %v227_v21 = vrot.slane %v226_v20, 2 }
  0xcf   :  { %v228_v23 = vadd.f32 %v227_v21, %v226_v20  ;;  %v788_v20 = vld [vmem:[#allocation8 + $0x28] sm:$0xff] }
  0xd1   :  { %v229_v25 = vrot.slane %v228_v23, 1 }
  0xd3   :  { %v230_v26 = vadd.f32 %v229_v25, %v228_v23 }
  0xd5   :  { %v231_v28 = vmul.f32 0.125, %v230_v26 }
  0xd7   :  { %v232_v29 = vsub.f32 %v220_v16, %v231_v28  ;;  %v233_v30 = vsub.f32 %v223_v17, %v231_v28 }
  0xd9   :  { %v235_v32 = vmul.f32 0.0, %v233_v30  ;;  %v236_v33 = vmul.f32 %v232_v29, %v232_v29 }
  0xdb   :  { %v237_v34 = vmul.f32 %v235_v32, %v235_v32 }
  0xdd   :  { %v238_v36 = vadd.f32 %v237_v34, %v236_v33  ;;  %v784_v34 = vld [vmem:[#allocation8 + $0x8] sm:$0xff] }
  0xdf   :  { %v239_v37 = vrot.slane %v238_v36, 4 }
  0xe1   :  { %v240_v39 = vadd.f32 %v239_v37, %v238_v36  ;;  %v783_v37 = vld [vmem:[#allocation8] sm:$0xff] }
  0xe3   :  { %v241_v40 = vrot.slane %v240_v39, 2 }
  0xe5   :  { %v242_v42 = vadd.f32 %v241_v40, %v240_v39 }
  0xe7   :  { %v243_v43 = vrot.slane %v242_v42, 1 }
  0xe9   :  { %v244_v45 = vadd.f32 %v243_v43, %v242_v42 }
  0xeb   :  { %v245_v46 = vmul.f32 0.125, %v244_v45 }
  0xed   :  { %v246_v47 = vadd.f32 1e-05, %v245_v46 }
  0xef   :  { %811 = vrsqrt.f32 %v246_v47  ;;  %vm253_vm1 = vweird.f32 %v246_v47 }
  0xf5   :  { %v812_v48 = vpop.eup %811 }
  0xf6   :  { %v248_v49 = vmul.f32 %v812_v48, %v246_v47  ;;  %vm254_vm0 = vweird.f32 %v812_v48 }
  0xf7   :  { %vm255_vm2 = vmor %vm253_vm1, %vm254_vm0 }
  0xf8   :  { %v249_v50 = vmul.f32 %v812_v48, %v248_v49 }
  0xfa   :  { %v250_v51 = vmul.f32 0.5, %v249_v50 }
  0xfc   :  { %v251_v52 = vsub.f32 1.5, %v250_v51 }
  0xfe   :  { %v252_v53 = vmul.f32 %v812_v48, %v251_v52 }
 0x100   :  { %v256_v54 = vsel %vm255_vm2, %v812_v48, %v252_v53 }
 0x101   :  { %v257_v55 = vmul.f32 %v256_v54, %v1084_v10 }
 0x103   :  { %v258_v56 = vmul.f32 %v257_v55, %v231_v28  ;;  %v263_v58 = vperm.slane %v257_v55, 1  ;;  %v786_v28 = vld [vmem:[#allocation8 + $0x18] sm:$0xff] }
 0x105   :  { %v260_v57 = vrot.slane %v258_v56, 7  ;;  %v264_v60 = vmul.f32 %v263_v58, %v220_v16  ;;  %v265_v61 = vmul.f32 %v263_v58, %v223_v17  ;;  %v789_v17 = vld [vmem:[#allocation8 + $0x30] sm:$0xff] }
 0x106   :  { %465 = vmatpush.bf16.msra.mxu2 %v789_v17  ;;  %v795_v17 = vld [vmem:[#allocation10 + $0x20] sm:$0xff] }
 0x107   :  { %v262_v59 = vsub.f32 %v1084_v10, %v260_v57 }
 0x109   :  { %v266_v62 = vperm.slane %v262_v59, 2 }
 0x10a   :  { %466 = vmatpush.bf16.msra.mxu2 %v788_v20 }
 0x10b   :  { %v267_v63 = vadd.f32 %v266_v62, %v264_v60  ;;  %v268_v0 = vadd.f32 %v266_v62, %v265_v61  ;;  %v132_v60 = vld [vmem:[%s1107_s6] sm:$0x7] }
 0x10c   :  { %v415_v61 = vperm.slane %v132_v60, 0 }
 0x10d   :  { %v269_v1 = vpack.c.bf16 %v268_v0, %v267_v63 }
 0x10e   :  { %467 = vmatpush.bf16.msra.mxu2 %v787_v24  ;;  %v793_v24 = vld [vmem:[#allocation10 + $0x10] sm:$0xff] }
 0x10f   :  { %343 = vmatmul.bf16.vlgmr.msra.gmra.mxu1 %v269_v1 }
 0x112   :  { %468 = vmatpush.bf16.msra.mxu2 %v786_v28 }
 0x116   :  { %469 = vmatpush.bf16.msra.mxu2 %v785_v31 }
 0x11a   :  { %470 = vmatpush.bf16.msra.mxu2 %v784_v34 }
 0x11e   :  { %471 = vmatpush.bf16.msra.mxu2 %v783_v37 }
 0x18c   :  { %v344_v2 = vpop.f32.mrf.mxu1 }
 0x18d   :  { %v345_v5 = vadd.f32 %v344_v2, %v286_v3 }
 0x18f   :  { %v349_v8 = vmax.f32 %v345_v5, 0.0 }
 0x194   :  { %v346_v4 = vpop.f32.mrf.mxu1 }
 0x195   :  { %v347_v6 = vadd.f32 %v346_v4, %v286_v3 }
 0x197   :  { %v350_v7 = vmax.f32 %v347_v6, 0.0 }
 0x199   :  { %v352_v9 = vmul.f32 0.0, %v350_v7  ;;  %v798_v7 = vld [vmem:[#allocation10 + $0x38] sm:$0xff] }
 0x19a   :  { %596 = vmatpush.bf16.msra.mxu3 %v798_v7 }
 0x19b   :  { %v353_v11 = vadd.f32 %v352_v9, %v349_v8 }
 0x19d   :  { %v354_v12 = vrot.slane %v353_v11, 4 }
 0x19f   :  { %v355_v13 = vadd.f32 %v354_v12, %v353_v11 }
 0x1a1   :  { %v356_v14 = vrot.slane %v355_v13, 2 }
 0x1a3   :  { %v357_v16 = vadd.f32 %v356_v14, %v355_v13  ;;  %v796_v13 = vld [vmem:[#allocation10 + $0x28] sm:$0xff] }
 0x1a5   :  { %v358_v18 = vrot.slane %v357_v16, 1 }
 0x1a7   :  { %v359_v19 = vadd.f32 %v358_v18, %v357_v16 }
 0x1a9   :  { %v360_v21 = vmul.f32 0.125, %v359_v19 }
 0x1ab   :  { %v361_v22 = vsub.f32 %v349_v8, %v360_v21  ;;  %v362_v23 = vsub.f32 %v352_v9, %v360_v21 }
 0x1ad   :  { %v364_v25 = vmul.f32 0.0, %v362_v23  ;;  %v365_v26 = vmul.f32 %v361_v22, %v361_v22 }
 0x1af   :  { %v366_v27 = vmul.f32 %v364_v25, %v364_v25 }
 0x1b1   :  { %v367_v29 = vadd.f32 %v366_v27, %v365_v26  ;;  %v792_v27 = vld [vmem:[#allocation10 + $0x8] sm:$0xff] }
 0x1b3   :  { %v368_v30 = vrot.slane %v367_v29, 4 }
 0x1b5   :  { %v369_v32 = vadd.f32 %v368_v30, %v367_v29  ;;  %v791_v30 = vld [vmem:[#allocation10] sm:$0xff] }
 0x1b7   :  { %v370_v33 = vrot.slane %v369_v32, 2 }
 0x1b9   :  { %v371_v35 = vadd.f32 %v370_v33, %v369_v32 }
 0x1bb   :  { %v372_v36 = vrot.slane %v371_v35, 1 }
 0x1bd   :  { %v373_v38 = vadd.f32 %v372_v36, %v371_v35 }
 0x1bf   :  { %v374_v39 = vmul.f32 0.125, %v373_v38 }
 0x1c1   :  { %v375_v40 = vadd.f32 1e-05, %v374_v39 }
 0x1c3   :  { %813 = vrsqrt.f32 %v375_v40  ;;  %vm382_vm4 = vweird.f32 %v375_v40 }
 0x1c9   :  { %v814_v41 = vpop.eup %813 }
 0x1ca   :  { %v377_v42 = vmul.f32 %v814_v41, %v375_v40  ;;  %vm383_vm3 = vweird.f32 %v814_v41 }
 0x1cb   :  { %vm384_vm5 = vmor %vm382_vm4, %vm383_vm3 }
 0x1cc   :  { %v378_v43 = vmul.f32 %v814_v41, %v377_v42 }
 0x1ce   :  { %v379_v44 = vmul.f32 0.5, %v378_v43 }
 0x1d0   :  { %v380_v45 = vsub.f32 1.5, %v379_v44 }
 0x1d2   :  { %v381_v46 = vmul.f32 %v814_v41, %v380_v45 }
 0x1d4   :  { %v385_v47 = vsel %vm384_vm5, %v814_v41, %v381_v46 }
 0x1d5   :  { %v386_v48 = vmul.f32 %v385_v47, %v1084_v10 }
 0x1d7   :  { %v387_v49 = vmul.f32 %v386_v48, %v360_v21  ;;  %v392_v51 = vperm.slane %v386_v48, 4  ;;  %v794_v21 = vld [vmem:[#allocation10 + $0x18] sm:$0xff] }
 0x1d9   :  { %v389_v50 = vrot.slane %v387_v49, 7  ;;  %v393_v53 = vmul.f32 %v392_v51, %v349_v8  ;;  %v394_v54 = vmul.f32 %v392_v51, %v352_v9  ;;  %v797_v9 = vld [vmem:[#allocation10 + $0x30] sm:$0xff] }
 0x1da   :  { %597 = vmatpush.bf16.msra.mxu3 %v797_v9 }
 0x1db   :  { %v391_v52 = vsub.f32 %v1084_v10, %v389_v50 }
 0x1dd   :  { %v395_v55 = vperm.slane %v391_v52, 5  ;;  %v810_v52 = vld [vmem:[%s1108_s7] ss:$0 sm:$0xff] }
 0x1de   :  { %598 = vmatpush.bf16.msra.mxu3 %v796_v13 }
 0x1df   :  { %v396_v56 = vadd.f32 %v395_v55, %v393_v53  ;;  %v397_v57 = vadd.f32 %v395_v55, %v394_v54 }
 0x1e1   :  { %v398_v58 = vpack.c.bf16 %v397_v57, %v396_v56 }
 0x1e2   :  { %599 = vmatpush.bf16.msra.mxu3 %v795_v17 }
 0x1e3   :  { %472 = vmatmul.bf16.vlgmr.msra.gmra.mxu2 %v398_v58 }
 0x1e6   :  { %600 = vmatpush.bf16.msra.mxu3 %v794_v21 }
 0x1ea   :  { %601 = vmatpush.bf16.msra.mxu3 %v793_v24 }
 0x1ee   :  { %602 = vmatpush.bf16.msra.mxu3 %v792_v27 }
 0x1f2   :  { %603 = vmatpush.bf16.msra.mxu3 %v791_v30 }
 0x266   :  { %v473_v59 = vpop.f32.mrf.mxu2 }
 0x267   :  { %v474_v63 = vadd.f32 %v473_v59, %v415_v61 }
 0x269   :  { %v478_v2 = vmax.f32 %v474_v63, 0.0 }
 0x26e   :  { %v475_v62 = vpop.f32.mrf.mxu2 }
 0x26f   :  { %v476_v0 = vadd.f32 %v475_v62, %v415_v61 }
 0x271   :  { %v479_v1 = vmax.f32 %v476_v0, 0.0 }
 0x273   :  { %v481_v3 = vmul.f32 0.0, %v479_v1 }
 0x275   :  { %v482_v10 = vadd.f32 %v481_v3, %v478_v2 }
 0x277   :  { %v483_v4 = vrot.slane %v482_v10, 4 }
 0x279   :  { %v484_v5 = vadd.f32 %v483_v4, %v482_v10 }
 0x27b   :  { %v485_v6 = vrot.slane %v484_v5, 2 }
 0x27d   :  { %v486_v8 = vadd.f32 %v485_v6, %v484_v5 }
 0x27f   :  { %v487_v11 = vrot.slane %v486_v8, 1 }
 0x281   :  { %v488_v12 = vadd.f32 %v487_v11, %v486_v8 }
 0x283   :  { %v489_v14 = vmul.f32 0.125, %v488_v12 }
 0x285   :  { %v490_v15 = vsub.f32 %v478_v2, %v489_v14  ;;  %v491_v16 = vsub.f32 %v481_v3, %v489_v14 }
 0x287   :  { %v493_v18 = vmul.f32 0.0, %v491_v16  ;;  %v494_v19 = vmul.f32 %v490_v15, %v490_v15 }
 0x289   :  { %v495_v20 = vmul.f32 %v493_v18, %v493_v18 }
 0x28b   :  { %v496_v22 = vadd.f32 %v495_v20, %v494_v19 }
 0x28d   :  { %v497_v23 = vrot.slane %v496_v22, 4 }
 0x28f   :  { %v498_v25 = vadd.f32 %v497_v23, %v496_v22 }
 0x291   :  { %v499_v26 = vrot.slane %v498_v25, 2 }
 0x293   :  { %v500_v28 = vadd.f32 %v499_v26, %v498_v25 }
 0x295   :  { %v501_v29 = vrot.slane %v500_v28, 1 }
 0x297   :  { %v502_v31 = vadd.f32 %v501_v29, %v500_v28 }
 0x299   :  { %v503_v32 = vmul.f32 0.125, %v502_v31 }
 0x29b   :  { %v504_v33 = vadd.f32 1e-05, %v503_v32 }
 0x29d   :  { %815 = vrsqrt.f32 %v504_v33  ;;  %vm511_vm7 = vweird.f32 %v504_v33 }
 0x2a3   :  { %v816_v34 = vpop.eup %815 }
 0x2a4   :  { %v506_v35 = vmul.f32 %v816_v34, %v504_v33  ;;  %vm512_vm6 = vweird.f32 %v816_v34 }
 0x2a5   :  { %vm513_vm8 = vmor %vm511_vm7, %vm512_vm6 }
 0x2a6   :  { %v507_v36 = vmul.f32 %v816_v34, %v506_v35 }
 0x2a8   :  { %v508_v37 = vmul.f32 0.5, %v507_v36 }
 0x2aa   :  { %v509_v38 = vsub.f32 1.5, %v508_v37 }
 0x2ac   :  { %v510_v39 = vmul.f32 %v816_v34, %v509_v38 }
 0x2ae   :  { %v514_v40 = vsel %vm513_vm8, %v816_v34, %v510_v39 }
 0x2af   :  { %v515_v41 = vmul.f32 %v514_v40, %v132_v60 }
 0x2b1   :  { %v516_v42 = vmul.f32 %v515_v41, %v489_v14  ;;  %v521_v44 = vperm.slane %v515_v41, 1 }
 0x2b3   :  { %v518_v43 = vrot.slane %v516_v42, 7  ;;  %v522_v46 = vmul.f32 %v521_v44, %v478_v2  ;;  %v523_v47 = vmul.f32 %v521_v44, %v481_v3 }
 0x2b5   :  { %v520_v45 = vsub.f32 %v132_v60, %v518_v43 }
 0x2b7   :  { %v524_v48 = vperm.slane %v520_v45, 2 }
 0x2b9   :  { %v525_v49 = vadd.f32 %v524_v48, %v522_v46  ;;  %v526_v50 = vadd.f32 %v524_v48, %v523_v47 }
 0x2bb   :  { %v527_v51 = vpack.c.bf16 %v526_v50, %v525_v49 }
 0x2bd   :  { %604 = vmatmul.bf16.vlgmr.msra.gmra.mxu3 %v527_v51 }
 0x340   :  { %v605_v53 = vpop.f32.mrf.mxu3 }
 0x341   :  { %v606_v54 = vadd.f32 %v810_v52, %v605_v53 }
 0x343   :  { %610 = vst [vmem:[#allocation13] sm:$0xff] %v606_v54 }
 0x348   :  { %v607_v55 = vpop.f32.mrf.mxu3 }
 0x349   :  { %v608_v56 = vadd.f32 %v810_v52, %v607_v55 }
 0x34b   :  { %611 = vst [vmem:[#allocation13 + $0x8] sm:$0xff] %v608_v56 }
 0x34c   :  { %624 = dma.vmem_to_hbm [thread:$0]  %s617_s13, 256, %s619_s16, [#allocation4], %s1004_s17, %s1004_s17, %s1005_s18  }
 0x34d   :  { %993 = dma.done.wait [#allocation4], 256  }
 0x34e   :  { %994 = vsyncadd [#allocation4], 4294967040 }
 0x34f   :  { %629 = vsyncpa [#allocation3], 1 }
 0x350   :  { %630 = vsyncpa [#allocation6], 1 }
 0x351   :  { %631 = vsyncpa [#allocation9], 1 }
 0x352   :  { %632 = vsyncpa [#allocation12], 1 }
 0x353   :  { %633 = vsyncpa [#allocation4], 1 }

</bundles_post_ra>
